<compile_context>
chip_gen: v7x
topology: tpu7x:2x2x1
jax: 0.10.0
libtpu: 0.0.40
codegen_flags: <defaults>
</compile_context>

<pallas_src>
import math

import jax
import jax.numpy as jnp
from jax.experimental import pallas as pl
from jax.experimental.pallas import tpu as pltpu

_LANES = 128
_SUBLANES = 8
_PALLAS_MIN_ELEMS = 1 << 16          # below this, fused XLA beats kernel launch
_DEFAULT_BLOCK_BYTES = 4 << 20       # ~4 MiB per input per grid step


def _sublane_multiple(itemsize):
    # Native tile second-minor dim: 8 (f32), 16 (bf16/f16), 32 (int8/fp8).
    return 8 * max(1, 4 // int(itemsize))


def _make_hinge_kernel(tile_rows, num_tiles, valid_in_last):
    """Build the kernel with all tiling facts baked in as Python constants."""
    block_elems = tile_rows * _LANES
    needs_mask = valid_in_last < block_elems

    def fold(vals):
        # Fold the (tile_rows, 128) f32 block into the resident (8, 128)
        # accumulator: pure VPU adds across vregs.  The expensive cross-lane
        # reduce is deferred to the wrapper (runs once on 1024 elements).
        return vals.reshape(-1, _SUBLANES, _LANES).sum(axis=0)

    def kernel(out_ref, y_ref, acc_ref):
        step = pl.program_id(0)

        @pl.when(step == 0)
        def _init():
            acc_ref[...] = jnp.zeros_like(acc_ref)

        x = out_ref[...].astype(jnp.float32)
        t = y_ref[...].astype(jnp.float32)
        hinged = jnp.maximum(1.0 - t * x, 0.0)

        if needs_mask:
            last = num_tiles - 1

            @pl.when(step != last)
            def _full():
                acc_ref[...] += fold(hinged)

            @pl.when(step == last)
            def _masked():
                # Element index inside this block; anything >= valid_in_last is
                # either lane-pad or boundary-block garbage -> contributes 0.
                row_i = jax.lax.broadcasted_iota(jnp.int32, hinged.shape, 0)
                lane_i = jax.lax.broadcasted_iota(jnp.int32, hinged.shape, 1)
                idx = row_i * _LANES + lane_i
                acc_ref[...] += fold(jnp.where(idx < valid_in_last, hinged, 0.0))
        else:
            acc_ref[...] += fold(hinged)

    return kernel


def hinge_loss(output, y, size_average=True, *, use_pallas=None,
               max_block_bytes=_DEFAULT_BLOCK_BYTES):
    assert output.shape == y.shape, (output.shape, y.shape)
    batch = output.shape[0]
    n = math.prod(output.shape)
    inv_scale = (1.0 / batch) if size_average else 1.0

    if use_pallas is None:
        use_pallas = n >= _PALLAS_MIN_ELEMS
    if not use_pallas:
        hinged = jnp.maximum(
            1.0 - y.astype(jnp.float32) * output.astype(jnp.float32), 0.0)
        return jnp.sum(hinged) * inv_scale

    itemsize_min = min(jnp.dtype(output.dtype).itemsize, jnp.dtype(y.dtype).itemsize)
    itemsize_max = max(jnp.dtype(output.dtype).itemsize, jnp.dtype(y.dtype).itemsize)
    mult = _sublane_multiple(itemsize_min)          # dtype-aware sublane multiple

    rows = -(-n // _LANES)                          # ceil(n / 128)
    rows_cap = max(mult, (max_block_bytes // (_LANES * itemsize_max)) // mult * mult)

    if rows >= mult:
        # Round DOWN to the sublane multiple so the only overhang is the last
        # (standard boundary) block -> large arrays are never padded/copied.
        tile_rows = min(rows_cap, (rows // mult) * mult)
        rows_slab = rows
    else:
        # Tiny (forced) input: one sublane tile; the cheap pad below covers it.
        tile_rows = mult
        rows_slab = mult

    num_tiles = -(-rows_slab // tile_rows)
    valid_in_last = n - (num_tiles - 1) * tile_rows * _LANES   # > 0 by construction

    out_flat = output.reshape(-1)
    y_flat = y.reshape(-1)
    pad = rows_slab * _LANES - n
    if pad:
        # Only when numel is not lane-aligned (pad < 128) or the input is tiny.
        # Pad values are irrelevant: the in-kernel mask ignores them.
        out_flat = jnp.pad(out_flat, (0, pad))
        y_flat = jnp.pad(y_flat, (0, pad))
    out2d = out_flat.reshape(rows_slab, _LANES)     # free bitcast when pad == 0
    y2d = y_flat.reshape(rows_slab, _LANES)

    kernel = _make_hinge_kernel(tile_rows, num_tiles, valid_in_last)

    partials = pl.pallas_call(
        kernel,
        out_shape=jax.ShapeDtypeStruct((_SUBLANES, _LANES), jnp.float32),
        grid_spec=pltpu.PrefetchScalarGridSpec(
            num_scalar_prefetch=0,
            grid=(num_tiles,),
            in_specs=[
                pl.BlockSpec((tile_rows, _LANES), lambda i: (i, 0)),
                pl.BlockSpec((tile_rows, _LANES), lambda i: (i, 0)),
            ],
            out_specs=pl.BlockSpec((_SUBLANES, _LANES), lambda i: (0, 0)),
        ),
        compiler_params=pltpu.CompilerParams(
            dimension_semantics=("arbitrary",),     # reduction axis, resident output
            vmem_limit_bytes=32 << 20,
        ),
    )(out2d, y2d)

    # Single tiny cross-lane reduce + scaling by the ORIGINAL batch size.
    return jnp.sum(partials) * inv_scale


if __name__ == "__main__":
    key = jax.random.PRNGKey(0)
    k1, k2, k3, k4, k5, k6 = jax.random.split(key, 6)

    def ref_hinge(o, t, size_average):
        h = jnp.maximum(1.0 - t.astype(jnp.float32) * o.astype(jnp.float32), 0.0)
        s = jnp.sum(h)
        return s / o.shape[0] if size_average else s

    # 1) Real MNIST digit-classification head: [batch=8, classes=10], +/-1 labels.
    #    (forced Pallas; auto-dispatch would pick the fused-jnp path at this size)
    out1 = jax.random.normal(k1, (8, 10), dtype=jnp.float32)
    y1 = jnp.where(jax.random.bernoulli(k2, 0.5, (8, 10)), 1.0, -1.0).astype(jnp.float32)
    got = hinge_loss(out1, y1, size_average=True, use_pallas=True)
    jax.block_until_ready(got)
    assert jnp.allclose(got, ref_hinge(out1, y1, True), rtol=1e-5, atol=1e-5), got

    got_sum = hinge_loss(out1, y1, size_average=False, use_pallas=True)
    jax.block_until_ready(got_sum)
    assert jnp.allclose(got_sum, ref_hinge(out1, y1, False), rtol=1e-5, atol=1e-5), got_sum

    # 2) Lane-aligned f32 input: zero-copy slab, multi-tile streaming, no tail mask.
    out2 = jax.random.normal(k3, (128, 128), dtype=jnp.float32)
    y2 = jnp.where(jax.random.bernoulli(k4, 0.5, (128, 128)), 1.0, -1.0).astype(jnp.float32)
    got2 = hinge_loss(out2, y2, size_average=True, use_pallas=True, max_block_bytes=16384)
    jax.block_until_ready(got2)
    assert jnp.allclose(got2, ref_hinge(out2, y2, True), rtol=1e-5, atol=1e-5), got2

    # 3) bf16, lane-aligned but ragged last tile: zero-copy slab, 16-row bf16 tiles,
    #    multi-step streaming + in-kernel tail mask on the final block only.
    out3 = jax.random.normal(k5, (512, 10), dtype=jnp.bfloat16)
    y3 = jnp.where(jax.random.bernoulli(k6, 0.5, (512, 10)), 1.0, -1.0).astype(jnp.bfloat16)
    got3 = hinge_loss(out3, y3, size_average=True, use_pallas=True, max_block_bytes=4096)
    jax.block_until_ready(got3)
    assert jnp.allclose(got3, ref_hinge(out3, y3, True), rtol=1e-3, atol=1e-3), got3

    # 4) Auto-dispatch sanity check (small input takes the plain-jnp path).
    got4 = hinge_loss(out1, y1)
    jax.block_until_ready(got4)
    assert jnp.allclose(got4, ref_hinge(out1, y1, True), rtol=1e-5, atol=1e-5), got4

    print("KERNEL_OK")
</pallas_src>

<mosaic_0001>
module attributes {stable_mosaic.version = 11 : i64} {
  func.func @kernel(%arg0: i32, %arg1: memref<8x128xf32, #tpu.memory_space<vmem>>, %arg2: memref<8x128xf32, #tpu.memory_space<vmem>>, %arg3: memref<8x128xf32, #tpu.memory_space<vmem>>) attributes {dimension_semantics = [#tpu.dimension_semantics<arbitrary>], iteration_bounds = array<i64: 1>, scalar_prefetch = 0 : i64, scratch_operands = 0 : i64, tpu.core_type = #tpu.core_type<tc>, window_params = [{transform_indices = @transform_0, window_bounds = array<i64: 8, 128>}, {transform_indices = @transform_1, window_bounds = array<i64: 8, 128>}, {pipeline_mode = #tpu.pipeline_mode<synchronous>, transform_indices = @transform_2, window_bounds = array<i64: 8, 128>}]} {
    %c0_i32 = arith.constant 0 : i32
    %0 = arith.cmpi eq, %arg0, %c0_i32 : i32
    %1 = arith.extui %0 : i1 to i32
    %c0_i32_0 = arith.constant 0 : i32
    %2 = arith.cmpi ne, %1, %c0_i32_0 : i32
    scf.if %2 {
      %cst_9 = arith.constant 0.000000e+00 : f32
      %16 = vector.broadcast %cst_9 : f32 to vector<8x128xf32>
      %c0_10 = arith.constant 0 : index
      %c0_11 = arith.constant 0 : index
      %17 = vector.load %arg3[%c0_10, %c0_11] : memref<8x128xf32, #tpu.memory_space<vmem>>, vector<8x128xf32>
      tpu.vector_store %arg3[%c0_10, %c0_11], %16 {strides = array<i32>} : memref<8x128xf32, #tpu.memory_space<vmem>>, vector<8x128xf32>,
    } else {
    }
    %c0 = arith.constant 0 : index
    %c0_1 = arith.constant 0 : index
    %3 = vector.load %arg1[%c0, %c0_1] : memref<8x128xf32, #tpu.memory_space<vmem>>, vector<8x128xf32>
    %c0_2 = arith.constant 0 : index
    %c0_3 = arith.constant 0 : index
    %4 = vector.load %arg2[%c0_2, %c0_3] : memref<8x128xf32, #tpu.memory_space<vmem>>, vector<8x128xf32>
    %5 = arith.mulf %4, %3 : vector<8x128xf32>
    %cst = arith.constant 1.000000e+00 : f32
    %6 = vector.broadcast %cst : f32 to vector<8x128xf32>
    %7 = arith.subf %6, %5 : vector<8x128xf32>
    %cst_4 = arith.constant 0.000000e+00 : f32
    %8 = vector.broadcast %cst_4 : f32 to vector<8x128xf32>
    %9 = arith.maximumf %7, %8 : vector<8x128xf32>
    %c0_i32_5 = arith.constant 0 : i32
    %10 = arith.cmpi ne, %arg0, %c0_i32_5 : i32
    %11 = arith.extui %10 : i1 to i32
    %c0_i32_6 = arith.constant 0 : i32
    %12 = arith.cmpi ne, %11, %c0_i32_6 : i32
    scf.if %12 {
      %c0_9 = arith.constant 0 : index
      %c0_10 = arith.constant 0 : index
      %16 = vector.load %arg3[%c0_9, %c0_10] : memref<8x128xf32, #tpu.memory_space<vmem>>, vector<8x128xf32>
      %17 = vector.shape_cast %9 : vector<8x128xf32> to vector<1x8x128xf32>
      %cst_11 = arith.constant dense<0.000000e+00> : vector<8x128xf32>
      %18 = vector.multi_reduction <add>, %17, %cst_11 [0] : vector<1x8x128xf32> to vector<8x128xf32>
      %19 = arith.addf %16, %18 : vector<8x128xf32>
      %c0_12 = arith.constant 0 : index
      %c0_13 = arith.constant 0 : index
      %20 = vector.load %arg3[%c0_12, %c0_13] : memref<8x128xf32, #tpu.memory_space<vmem>>, vector<8x128xf32>
      tpu.vector_store %arg3[%c0_12, %c0_13], %19 {strides = array<i32>} : memref<8x128xf32, #tpu.memory_space<vmem>>, vector<8x128xf32>,
    } else {
    }
    %c0_i32_7 = arith.constant 0 : i32
    %13 = arith.cmpi eq, %arg0, %c0_i32_7 : i32
    %14 = arith.extui %13 : i1 to i32
    %c0_i32_8 = arith.constant 0 : i32
    %15 = arith.cmpi ne, %14, %c0_i32_8 : i32
    scf.if %15 {
      %16 = tpu.iota {dimensions = array<i32: 0>} : vector<8x128xi32>
      %17 = tpu.iota {dimensions = array<i32: 1>} : vector<8x128xi32>
      %c128_i32 = arith.constant 128 : i32
      %18 = vector.broadcast %c128_i32 : i32 to vector<8x128xi32>
      %19 = arith.muli %16, %18 : vector<8x128xi32>
      %20 = arith.addi %19, %17 : vector<8x128xi32>
      %c0_9 = arith.constant 0 : index
      %c0_10 = arith.constant 0 : index
      %21 = vector.load %arg3[%c0_9, %c0_10] : memref<8x128xf32, #tpu.memory_space<vmem>>, vector<8x128xf32>
      %c80_i32 = arith.constant 80 : i32
      %22 = vector.broadcast %c80_i32 : i32 to vector<8x128xi32>
      %23 = arith.cmpi slt, %20, %22 : vector<8x128xi32>
      %cst_11 = arith.constant 0.000000e+00 : f32
      %24 = vector.broadcast %cst_11 : f32 to vector<8x128xf32>
      %25 = arith.select %23, %9, %24 : vector<8x128xi1>, vector<8x128xf32>
      %26 = vector.shape_cast %25 : vector<8x128xf32> to vector<1x8x128xf32>
      %cst_12 = arith.constant dense<0.000000e+00> : vector<8x128xf32>
      %27 = vector.multi_reduction <add>, %26, %cst_12 [0] : vector<1x8x128xf32> to vector<8x128xf32>
      %28 = arith.addf %21, %27 : vector<8x128xf32>
      %c0_13 = arith.constant 0 : index
      %c0_14 = arith.constant 0 : index
      %29 = vector.load %arg3[%c0_13, %c0_14] : memref<8x128xf32, #tpu.memory_space<vmem>>, vector<8x128xf32>
      tpu.vector_store %arg3[%c0_13, %c0_14], %28 {strides = array<i32>} : memref<8x128xf32, #tpu.memory_space<vmem>>, vector<8x128xf32>,
    } else {
    }
    return
  }
  func.func @transform_0(%arg0: i32) -> (i32, i32) {
    %c0_i32 = arith.constant 0 : i32
    %c0_i32_0 = arith.constant 0 : i32
    return %arg0, %c0_i32 : i32, i32
  }
  func.func @transform_1(%arg0: i32) -> (i32, i32) {
    %c0_i32 = arith.constant 0 : i32
    %c0_i32_0 = arith.constant 0 : i32
    return %arg0, %c0_i32 : i32, i32
  }
  func.func @transform_2(%arg0: i32) -> (i32, i32) {
    %c0_i32 = arith.constant 0 : i32
    %c0_i32_0 = arith.constant 0 : i32
    %c0_i32_1 = arith.constant 0 : i32
    return %c0_i32, %c0_i32_0 : i32, i32
  }
}

</mosaic_0001>

<bundles_post_ra>
// kernel: tpu_custom_call.1
= control target key start
LH: loop header
LB: loop body
LE: loop exit
PB: predicated region body
PF: predicated region fallthrough
CT: control target
= control target key end

     0   :  { %7 = vsyncpa [#allocation3], 0  ;;  %s215_s0 = inlined_call_operand.hbm [shape: f32[8,128], index: 0, kind: input, shape index: {}]   ;;  %s216_s1 = inlined_call_operand.hbm [shape: f32[8,128], index: 1, kind: input, shape index: {}]   ;;  %s217_s2 = inlined_call_operand.hbm [shape: f32[8,128], index: 2, kind: output, shape index: {}]  }
   0x1   :  { %8 = vsyncpa [#allocation6], 0 }
   0x2   :  { %9 = vsyncpa [#allocation4], 0  ;;  %s161_s9 = smov [#allocation2]   ;;  %s162_s11 = smov [#allocation5]  }
   0x3   :  { %s16_s10 = sshll.u32 %s161_s9, 4  ;;  %s26_s12 = sshll.u32 %s162_s11, 4  ;;  %s17_s10 = int_to_ptr.vmem [resolvable:$true] %s16_s10  ;;  %s27_s12 = int_to_ptr.vmem [resolvable:$true] %s26_s12 }
   0x4   :  { %s89_s15 = scalar_lea.hbm %s215_s0, 128 }
   0x5   :  { %p90_p0 = scmp.ne.s32.totalorder %s215_s0, %s89_s15  ;;  %p93_p1 = scmp.lt.u32.totalorder %s89_s15, %s215_s0 }
   0x7   :  { %p95_p2 = pnand %p93_p1, %p90_p0 }
   0x9   :  { %98 = shalt.err (!%p95_p2)
}
   0xa   :  { %s99_s20 = scalar_lea.vmem %s17_s10, 128  ;;  %p104_p4 = scmp.lt.s32.totalorder %s17_s10, %s17_s10 }
   0xb   :  { %p100_p3 = scmp.ne.s32.totalorder %s17_s10, %s99_s20  ;;  %p105_p5 = scmp.lt.s32.totalorder %s99_s20, %s99_s20 }
   0xd   :  { %p106_p6 = por %p105_p5, %p104_p4 }
   0xf   :  { %p107_p7 = pnand %p106_p6, %p100_p3 }
  0x11   :  { %110 = shalt.err (!%p107_p7)
}
  0x12   :  { %19 = dma.hbm_to_vmem [thread:$0]  %s215_s0, 128, %s17_s10, [#allocation3]  }
  0x13   :  { %s111_s25 = scalar_lea.hbm %s216_s1, 128 }
  0x14   :  { %p112_p8 = scmp.ne.s32.totalorder %s216_s1, %s111_s25  ;;  %p115_p9 = scmp.lt.u32.totalorder %s111_s25, %s216_s1 }
  0x16   :  { %p117_p10 = pnand %p115_p9, %p112_p8 }
  0x18   :  { %120 = shalt.err (!%p117_p10)
}
  0x19   :  { %s121_s30 = scalar_lea.vmem %s27_s12, 128  ;;  %p126_p12 = scmp.lt.s32.totalorder %s27_s12, %s27_s12 }
  0x1a   :  { %p122_p11 = scmp.ne.s32.totalorder %s27_s12, %s121_s30  ;;  %p127_p13 = scmp.lt.s32.totalorder %s121_s30, %s121_s30 }
  0x1c   :  { %p128_p0 = por %p127_p13, %p126_p12 }
  0x1e   :  { %p129_p1 = pnand %p128_p0, %p122_p11 }
  0x20   :  { %132 = shalt.err (!%p129_p1)
}
  0x21   :  { %29 = dma.hbm_to_vmem [thread:$0]  %s216_s1, 128, %s27_s12, [#allocation6]  }
  0x22   :  { %155 = dma.done.wait [#allocation3], 128  }
  0x23   :  { %156 = vsyncadd [#allocation3], 4294967168 }
  0x24   :  { %157 = dma.done.wait [#allocation6], 128  }
  0x25   :  { %158 = vsyncadd [#allocation6], 4294967168  ;;  %v57_v0 = vlaneseq  ;;  %v41_v4 = vld [vmem:[#allocation2] sm:$0xff]  ;;  %v42_v5 = vld [vmem:[#allocation5] sm:$0xff]  ;;  %s163_s4 = smov [#allocation7]  }
  0x26   :  { %v43_v7 = vmul.f32 %v42_v5, %v41_v4  ;;  %s75_s5 = sshll.u32 %s163_s4, 4  ;;  %s76_s5 = int_to_ptr.vmem [resolvable:$true] %s75_s5 }
  0x27   :  { %v58_v1 = vshrl.u32 %v57_v0, 7  ;;  %v60_v2 = vand.u32 127, %v57_v0  ;;  %s133_s1 = scalar_lea.vmem %s76_s5, 128  ;;  %p138_p3 = scmp.lt.s32.totalorder %s76_s5, %s76_s5 }
  0x28   :  { %v44_v8 = vsub.f32 1.0, %v43_v7  ;;  %p134_p2 = scmp.ne.s32.totalorder %s76_s5, %s133_s1  ;;  %p139_p4 = scmp.lt.s32.totalorder %s133_s1, %s133_s1 }
  0x29   :  { %v61_v3 = vmul.u32 128, %v58_v1 }
  0x2a   :  { %v45_v9 = vmax.f32 %v44_v8, 0.0  ;;  %p140_p5 = por %p139_p4, %p138_p3 }
  0x2b   :  { %v62_v6 = vadd.s32 %v61_v3, %v60_v2 }
  0x2c   :  { %p141_p6 = pnand %p140_p5, %p134_p2 }
  0x2d   :  { %vm64_vm0 = vcmp.lt.s32.totalorder %v62_v6, 80 }
  0x2e   :  { %v65_v10 = vsel %vm64_vm0, %v45_v9, 0.0 }
  0x2f   :  { %68 = vst [vmem:[#allocation7] sm:$0xff] %v65_v10 }
  0x30   :  { %144 = shalt.err (!%p141_p6)
}
  0x31   :  { %s145_s8 = scalar_lea.hbm %s217_s2, 128 }
  0x32   :  { %p146_p7 = scmp.ne.s32.totalorder %s217_s2, %s145_s8  ;;  %p149_p8 = scmp.lt.u32.totalorder %s145_s8, %s217_s2 }
  0x34   :  { %p151_p9 = pnand %p149_p8, %p146_p7 }
  0x36   :  { %154 = shalt.err (!%p151_p9)
}
  0x37   :  { %78 = dma.vmem_to_hbm [thread:$0]  %s76_s5, 128, %s217_s2, [#allocation4]  }
  0x38   :  { %159 = dma.done.wait [#allocation4], 128  }
  0x39   :  { %160 = vsyncadd [#allocation4], 4294967168 }
  0x3a   :  { %82 = vsyncpa [#allocation3], 1 }
  0x3b   :  { %83 = vsyncpa [#allocation6], 1 }
  0x3c   :  { %84 = vsyncpa [#allocation4], 1 }

</bundles_post_ra>
